<compile_context>
chip_gen: v6e
topology: v6e:2x2x1
jax: 0.10.0
libtpu: 0.0.40
codegen_flags: <defaults>
</compile_context>

<pallas_src>
import functools

import jax
import jax.numpy as jnp
import numpy as np
from jax.experimental import pallas as pl
from jax.experimental.pallas import tpu as pltpu

_SELU_ALPHA = 1.6732632423543772848170429916717
_SELU_SCALE = 1.0507009873554804934193349852946
_LN_EPS = 1e-5


def _glu_kernel(x_ref, w_ref, b_ref, ln_ref, o_ref):
    """x:(tb,F_in)  w:(F_in,2*F_out)=[Wb|Wg]  b:(1,2*F_out)=[bb|bg]  ln:(2,F_out)=[gamma;beta]."""
    f_out = o_ref.shape[-1]

    # One fused MXU pass for both branches; f32 accumulator.
    h2 = jnp.dot(x_ref[...], w_ref[...], preferred_element_type=jnp.float32)
    h2 = h2 + b_ref[...].astype(jnp.float32)

    h = h2[:, :f_out]        # block branch pre-LayerNorm
    g = h2[:, f_out:]        # gate branch pre-sigmoid

    # --- gate: sigmoid --------------------------------------------------------
    gate = jax.nn.sigmoid(g)

    # --- block: LayerNorm + SELU (f32 epilogue) -------------------------------
    mean = jnp.mean(h, axis=-1, keepdims=True)
    centered = h - mean
    var = jnp.mean(centered * centered, axis=-1, keepdims=True)
    hn = centered * jax.lax.rsqrt(var + _LN_EPS)
    gamma = ln_ref[0:1, :].astype(jnp.float32)
    beta = ln_ref[1:2, :].astype(jnp.float32)
    hn = hn * gamma + beta
    # Clamp exp argument: jnp.where evaluates both branches.
    neg = _SELU_ALPHA * (jnp.exp(jnp.minimum(hn, 0.0)) - 1.0)
    y = _SELU_SCALE * jnp.where(hn > 0, hn, neg)

    # --- gated output ---------------------------------------------------------
    o_ref[...] = (y * gate).astype(o_ref.dtype)


@functools.partial(jax.jit, static_argnames=("tb",))
def gated_linear_unit(x, wg, bg, wb, bb, gamma, beta, *, tb=256):
    """x: (B, F_in); wg/wb: (F_in, F_out); bg/bb/gamma/beta: (1, F_out)."""
    B, F_in = x.shape
    F_out = wg.shape[1]

    # --- fuse parameters (cheap host-side plumbing, cuts DMA descriptor count) --
    w = jnp.concatenate([wb, wg], axis=1)                              # (F_in, 2*F_out)
    b = jnp.concatenate([bb.reshape(1, F_out), bg.reshape(1, F_out)],  # (1, 2*F_out)
                        axis=1)
    ln = jnp.concatenate([gamma.reshape(1, F_out),                     # (2, F_out)
                          beta.reshape(1, F_out)], axis=0)

    # --- batch tiling: large tile, sublane-aligned, pad batch if needed --------
    sub = 16 if x.dtype == jnp.bfloat16 else 8
    B_sub = pl.cdiv(B, sub) * sub
    tb = max(sub, min((tb // sub) * sub, B_sub))
    B_pad = pl.cdiv(B, tb) * tb
    if B_pad != B:
        x = jnp.pad(x, ((0, B_pad - B), (0, 0)))
    grid = (B_pad // tb,)

    itm = x.dtype.itemsize
    w_bytes = w.size * w.dtype.itemsize
    # x/out double-buffered tiles + resident (double-buffered) weights/params
    # + f32 intermediates headroom.
    tile_bytes = (2 * tb * F_in * itm
                  + 2 * tb * F_out * itm
                  + 2 * w_bytes + 2 * b.size * b.dtype.itemsize
                  + 2 * ln.size * ln.dtype.itemsize
                  + 6 * tb * 2 * F_out * 4)
    vmem_limit = int(min(max(2 * tile_bytes, 32 << 20), 64 << 20))

    cost = pl.CostEstimate(
        flops=2 * B_pad * F_in * 2 * F_out,
        transcendentals=2 * B_pad * F_out,
        bytes_accessed=(B_pad * F_in * itm + w_bytes
                        + b.size * b.dtype.itemsize + ln.size * ln.dtype.itemsize
                        + B_pad * F_out * itm),
    )

    out = pl.pallas_call(
        _glu_kernel,
        out_shape=jax.ShapeDtypeStruct((B_pad, F_out), x.dtype),
        grid=grid,
        in_specs=[
            pl.BlockSpec((tb, F_in), lambda i: (i, 0)),        # x tile
            pl.BlockSpec((F_in, 2 * F_out), lambda i: (0, 0)), # fused [Wb|Wg] (resident)
            pl.BlockSpec((1, 2 * F_out), lambda i: (0, 0)),    # fused [bb|bg]
            pl.BlockSpec((2, F_out), lambda i: (0, 0)),        # LN [gamma; beta]
        ],
        out_specs=pl.BlockSpec((tb, F_out), lambda i: (i, 0)),
        compiler_params=pltpu.CompilerParams(
            dimension_semantics=("parallel",),
            vmem_limit_bytes=vmem_limit),
        cost_estimate=cost,
    )(x, w, b, ln)

    return out[:B] if B_pad != B else out


def _reference(x, wg, bg, wb, bb, gamma, beta):
    x = x.astype(jnp.float32)
    g = jax.nn.sigmoid(x @ wg + bg)
    h = x @ wb + bb
    mean = jnp.mean(h, axis=-1, keepdims=True)
    var = jnp.mean((h - mean) ** 2, axis=-1, keepdims=True)
    hn = (h - mean) * jax.lax.rsqrt(var + _LN_EPS) * gamma + beta
    y = _SELU_SCALE * jnp.where(hn > 0, hn, _SELU_ALPHA * (jnp.exp(jnp.minimum(hn, 0.0)) - 1.0))
    return y * g


if __name__ == "__main__":
    B, F_IN, F_OUT = 8, 32, 64

    key = jax.random.PRNGKey(0)
    kx, kwg, kbg, kwb, kbb = jax.random.split(key, 5)

    x = jax.random.normal(kx, (B, F_IN), dtype=jnp.float32)
    # "Linear" parameters (fan-in scaled), stored (F_in, F_out).
    wg = jax.random.normal(kwg, (F_IN, F_OUT), dtype=jnp.float32) / np.sqrt(F_IN)
    bg = jax.random.normal(kbg, (1, F_OUT), dtype=jnp.float32) * 0.01
    wb = jax.random.normal(kwb, (F_IN, F_OUT), dtype=jnp.float32) / np.sqrt(F_IN)
    bb = jax.random.normal(kbb, (1, F_OUT), dtype=jnp.float32) * 0.01
    gamma = jnp.ones((1, F_OUT), dtype=jnp.float32)
    beta = jnp.zeros((1, F_OUT), dtype=jnp.float32)

    out = gated_linear_unit(x, wg, bg, wb, bb, gamma, beta)
    out = jax.block_until_ready(out)

    ref = _reference(x, wg, bg, wb, bb, gamma, beta)
    np.testing.assert_allclose(np.asarray(out), np.asarray(ref),
                               rtol=1e-5, atol=1e-5)
    print("KERNEL_OK")
</pallas_src>

<mosaic_0001>
module attributes {stable_mosaic.version = 11 : i64} {
  func.func @_glu_kernel(%arg0: i32, %arg1: memref<8x32xf32, #tpu.memory_space<vmem>>, %arg2: memref<32x128xf32, #tpu.memory_space<vmem>>, %arg3: memref<1x128xf32, #tpu.memory_space<vmem>>, %arg4: memref<2x64xf32, #tpu.memory_space<vmem>>, %arg5: memref<8x64xf32, #tpu.memory_space<vmem>>) attributes {dimension_semantics = [#tpu.dimension_semantics<parallel>], iteration_bounds = array<i64: 1>, scalar_prefetch = 0 : i64, scratch_operands = 0 : i64, tpu.core_type = #tpu.core_type<tc>, window_params = [{transform_indices = @transform_0, window_bounds = array<i64: 8, 32>}, {pipeline_mode = #tpu.pipeline_mode<synchronous>, transform_indices = @transform_1, window_bounds = array<i64: 32, 128>}, {pipeline_mode = #tpu.pipeline_mode<synchronous>, transform_indices = @transform_2, window_bounds = array<i64: 1, 128>}, {pipeline_mode = #tpu.pipeline_mode<synchronous>, transform_indices = @transform_3, window_bounds = array<i64: 2, 64>}, {transform_indices = @transform_4, window_bounds = array<i64: 8, 64>}]} {
    %c0 = arith.constant 0 : index
    %c0_0 = arith.constant 0 : index
    %0 = vector.load %arg1[%c0, %c0_0] : memref<8x32xf32, #tpu.memory_space<vmem>>, vector<8x32xf32>
    %c0_1 = arith.constant 0 : index
    %c0_2 = arith.constant 0 : index
    %1 = vector.load %arg2[%c0_1, %c0_2] : memref<32x128xf32, #tpu.memory_space<vmem>>, vector<32x128xf32>
    %cst = arith.constant dense<0.000000e+00> : vector<8x128xf32>
    %2 = tpu.matmul %0, %1, %cst {dimension_numbers = #tpu.dot_dimension_numbers<[1], [0], [0], [1], [0, 0, 1, 1], [], []>} : vector<8x32xf32>, vector<32x128xf32>, vector<8x128xf32> -> vector<8x128xf32>
    %c0_3 = arith.constant 0 : index
    %c0_4 = arith.constant 0 : index
    %3 = vector.load %arg3[%c0_3, %c0_4] : memref<1x128xf32, #tpu.memory_space<vmem>>, vector<1x128xf32>
    %4 = vector.broadcast %3 : vector<1x128xf32> to vector<8x128xf32>
    %5 = arith.addf %2, %4 : vector<8x128xf32>
    %6 = vector.extract_strided_slice %5 {offsets = [0, 0], sizes = [8, 64], strides = [1, 1]} : vector<8x128xf32> to vector<8x64xf32>
    %7 = vector.extract_strided_slice %5 {offsets = [0, 64], sizes = [8, 64], strides = [1, 1]} : vector<8x128xf32> to vector<8x64xf32>
    %8 = arith.negf %7 : vector<8x64xf32>
    %9 = math.exp %8 : vector<8x64xf32>
    %cst_5 = arith.constant 1.000000e+00 : f32
    %10 = vector.broadcast %cst_5 : f32 to vector<8x64xf32>
    %11 = arith.addf %10, %9 : vector<8x64xf32>
    %12 = arith.divf %10, %11 : vector<8x64xf32>
    %cst_6 = arith.constant dense<0.000000e+00> : vector<8xf32>
    %13 = vector.multi_reduction <add>, %6, %cst_6 [1] : vector<8x64xf32> to vector<8xf32>
    %14 = vector.shape_cast %13 : vector<8xf32> to vector<8x1xf32>
    %cst_7 = arith.constant 6.400000e+01 : f32
    %15 = vector.broadcast %cst_7 : f32 to vector<8x1xf32>
    %16 = arith.divf %14, %15 : vector<8x1xf32>
    %17 = vector.broadcast %16 : vector<8x1xf32> to vector<8x64xf32>
    %18 = arith.subf %6, %17 : vector<8x64xf32>
    %19 = arith.mulf %18, %18 : vector<8x64xf32>
    %cst_8 = arith.constant dense<0.000000e+00> : vector<8xf32>
    %20 = vector.multi_reduction <add>, %19, %cst_8 [1] : vector<8x64xf32> to vector<8xf32>
    %21 = vector.shape_cast %20 : vector<8xf32> to vector<8x1xf32>
    %cst_9 = arith.constant 6.400000e+01 : f32
    %22 = vector.broadcast %cst_9 : f32 to vector<8x1xf32>
    %23 = arith.divf %21, %22 : vector<8x1xf32>
    %cst_10 = arith.constant 9.99999974E-6 : f32
    %24 = vector.broadcast %cst_10 : f32 to vector<8x1xf32>
    %25 = arith.addf %23, %24 : vector<8x1xf32>
    %26 = math.rsqrt %25 : vector<8x1xf32>
    %27 = vector.broadcast %26 : vector<8x1xf32> to vector<8x64xf32>
    %28 = arith.mulf %18, %27 : vector<8x64xf32>
    %c0_11 = arith.constant 0 : index
    %c0_12 = arith.constant 0 : index
    %29 = vector.load %arg4[%c0_11, %c0_12] : memref<2x64xf32, #tpu.memory_space<vmem>>, vector<1x64xf32>
    %c1 = arith.constant 1 : index
    %c0_13 = arith.constant 0 : index
    %30 = vector.load %arg4[%c1, %c0_13] : memref<2x64xf32, #tpu.memory_space<vmem>>, vector<1x64xf32>
    %31 = vector.broadcast %29 : vector<1x64xf32> to vector<8x64xf32>
    %32 = arith.mulf %28, %31 : vector<8x64xf32>
    %33 = vector.broadcast %30 : vector<1x64xf32> to vector<8x64xf32>
    %34 = arith.addf %32, %33 : vector<8x64xf32>
    %cst_14 = arith.constant 0.000000e+00 : f32
    %35 = vector.broadcast %cst_14 : f32 to vector<8x64xf32>
    %36 = arith.minimumf %34, %35 : vector<8x64xf32>
    %37 = math.exp %36 : vector<8x64xf32>
    %cst_15 = arith.constant 1.000000e+00 : f32
    %38 = vector.broadcast %cst_15 : f32 to vector<8x64xf32>
    %39 = arith.subf %37, %38 : vector<8x64xf32>
    %cst_16 = arith.constant 1.67326319 : f32
    %40 = vector.broadcast %cst_16 : f32 to vector<8x64xf32>
    %41 = arith.mulf %40, %39 : vector<8x64xf32>
    %cst_17 = arith.constant 0.000000e+00 : f32
    %42 = vector.broadcast %cst_17 : f32 to vector<8x64xf32>
    %43 = arith.cmpf ogt, %34, %42 : vector<8x64xf32>
    %44 = arith.select %43, %34, %41 : vector<8x64xi1>, vector<8x64xf32>
    %cst_18 = arith.constant 1.05070102 : f32
    %45 = vector.broadcast %cst_18 : f32 to vector<8x64xf32>
    %46 = arith.mulf %45, %44 : vector<8x64xf32>
    %47 = arith.mulf %46, %12 : vector<8x64xf32>
    %c0_19 = arith.constant 0 : index
    %c0_20 = arith.constant 0 : index
    %48 = vector.load %arg5[%c0_19, %c0_20] : memref<8x64xf32, #tpu.memory_space<vmem>>, vector<8x64xf32>
    tpu.vector_store %arg5[%c0_19, %c0_20], %47 {strides = array<i32>} : memref<8x64xf32, #tpu.memory_space<vmem>>, vector<8x64xf32>,
    return
  }
  func.func @transform_0(%arg0: i32) -> (i32, i32) {
    %c0_i32 = arith.constant 0 : i32
    %c0_i32_0 = arith.constant 0 : i32
    return %arg0, %c0_i32 : i32, i32
  }
  func.func @transform_1(%arg0: i32) -> (i32, i32) {
    %c0_i32 = arith.constant 0 : i32
    %c0_i32_0 = arith.constant 0 : i32
    %c0_i32_1 = arith.constant 0 : i32
    return %c0_i32, %c0_i32_0 : i32, i32
  }
  func.func @transform_2(%arg0: i32) -> (i32, i32) {
    %c0_i32 = arith.constant 0 : i32
    %c0_i32_0 = arith.constant 0 : i32
    %c0_i32_1 = arith.constant 0 : i32
    return %c0_i32, %c0_i32_0 : i32, i32
  }
  func.func @transform_3(%arg0: i32) -> (i32, i32) {
    %c0_i32 = arith.constant 0 : i32
    %c0_i32_0 = arith.constant 0 : i32
    %c0_i32_1 = arith.constant 0 : i32
    return %c0_i32, %c0_i32_0 : i32, i32
  }
  func.func @transform_4(%arg0: i32) -> (i32, i32) {
    %c0_i32 = arith.constant 0 : i32
    %c0_i32_0 = arith.constant 0 : i32
    return %arg0, %c0_i32 : i32, i32
  }
}

</mosaic_0001>

<bundles_post_ra>
// kernel: gated_linear_unit.1
= control target key start
LH: loop header
LB: loop body
LE: loop exit
PB: predicated region body
PF: predicated region fallthrough
CT: control target
= control target key end

     0   :  { %v221_v1 = vmov 0.0   ;;  %vm222_vm0 = vmmov 0   ;;  %s280_s0 = inlined_call_operand.vmem [shape: f32[8,32], index: 0, kind: input, shape index: {}]   ;;  %s281_s1 = inlined_call_operand.vmem [shape: f32[32,128], index: 1, kind: input, shape index: {}]   ;;  %s282_s2 = inlined_call_operand.vmem [shape: f32[1,128], index: 2, kind: input, shape index: {}]   ;;  %s283_s3 = inlined_call_operand.vmem [shape: f32[2,64], index: 3, kind: input, shape index: {}]   ;;  %s284_s4 = inlined_call_operand.hbm [shape: f32[8,64], index: 4, kind: output, shape index: {}]  }
   0x1   :  { %v22_v0 = vld [vmem:[%s281_s1 + $0x18] sm:$0xff]  ;;  %176 = vmatprep.subr.mxu0 %v221_v1  ;;  %v21_v2 = vld [vmem:[%s281_s1 + $0x10] sm:$0xff]  ;;  %184 = vmatprep.mubr.msk.f32.mxu0 %vm222_vm0, %v221_v1 }
   0x2   :  { %177 = vmatpush3.msra.mxu0 %v22_v0 }
   0x3   :  { %9 = vsyncpa [#allocation3], 0  ;;  %178 = vmatprep.subr.mxu0 %v221_v1  ;;  %v20_v3 = vld [vmem:[%s281_s1 + $0x8] sm:$0xff]  ;;  %v19_v4 = vld [vmem:[%s281_s1] sm:$0xff]  ;;  %vm30_vm1 = vcmask 261120   ;;  %vm110_vm2 = vcmask 523264  }
   0x4   :  { %179 = vmatpush3.msra.mxu0 %v21_v2  ;;  %v18_v5 = vld [vmem:[%s280_s0] sm:$0xff]  ;;  %s223_s0 = smov 64   ;;  %s224_s29 = smov [#allocation2]  }
   0x5   :  { %180 = vmatprep.subr.mxu0 %v221_v1  ;;  %v165_v6 = vld [vmem:[%s282_s2] ss:$0 sm:$0xff]  ;;  %v169_v26 = vld [vmem:[%s283_s3 + $0x1] ss:$0 sm:$0xff]  ;;  %s157_s30 = sshll.u32 %s224_s29, 4  ;;  %s158_s30 = int_to_ptr.vmem [resolvable:$true] %s157_s30 }
   0x6   :  { %181 = vmatpush3.msra.mxu0 %v20_v3  ;;  %v168_v24 = vld [vmem:[%s283_s3] ss:$0 sm:$0xff]  ;;  %s199_s5 = scalar_lea.vmem %s158_s30, 128  ;;  %p204_p1 = scmp.lt.s32.totalorder %s158_s30, %s158_s30 }
   0x7   :  { %182 = vmatprep.subr.mxu0 %v221_v1  ;;  %p200_p0 = scmp.ne.s32.totalorder %s158_s30, %s199_s5  ;;  %p205_p2 = scmp.lt.s32.totalorder %s199_s5, %s199_s5 }
   0x8   :  { %183 = vmatpush3.msra.mxu0 %v19_v4 }
   0x9   :  { %185 = vmatmul.mubr.msk.f32.vlgmr.msra.gmra.mxu0 %vm30_vm1, %v18_v5  ;;  %p206_p3 = por %p205_p2, %p204_p1 }
   0xb   :  { %p207_p4 = pnand %p206_p3, %p200_p0 }
  0xc9   :  { %v100_v7 = vpop.f32.mrf.mxu0 }
  0xca   :  { %v101_v8 = vadd.f32 %v165_v6, %v100_v7 }
  0xcb   :  { %v186_v9 = vpop.f32.mrf.mxu0 }
  0xcc   :  { %v167_v10 = vmul.f32 -1.442695, %v101_v8  ;;  %v111_v11 = vsel %vm110_vm2, %v101_v8, 0.0 }
  0xcd   :  { %112 = vadd.xlane.f32.xlu0 %v111_v11 }
  0xce   :  { %191 = vpow2.f32 %v167_v10 }
  0xdb   :  { %v192_v12 = vpop.eup %191 }
  0xdc   :  { %v107_v13 = vadd.f32 1.0, %v192_v12 }
  0xde   :  { %193 = vrcp.f32 %v107_v13 }
  0xeb   :  { %v194_v14 = vpop.eup %193 }
  0xec   :  { %146 = vrot.lane.b32.xlu1 %v194_v14, %s223_s0 }
 0x156   :  { %v113_v15 = vpop.xlane.xlu0 %112 }
 0x157   :  { %v115_v16 = vmul.f32 0.015625, %v113_v15 }
 0x159   :  { %v116_v17 = vsub.f32 %v101_v8, %v115_v16 }
 0x15b   :  { %v117_v18 = vmul.f32 %v116_v17, %v116_v17 }
 0x15d   :  { %v118_v19 = vsel %vm110_vm2, %v117_v18, 0.0 }
 0x15e   :  { %119 = vadd.xlane.f32.xlu0 %v118_v19  ;;  %v147_v36 = vpop.permute.xlu1 %146 }
 0x1e7   :  { %v120_v20 = vpop.xlane.xlu0 %119 }
 0x1e8   :  { %v121_v21 = vmul.f32 0.015625, %v120_v20 }
 0x1ea   :  { %v122_v22 = vadd.f32 1e-05, %v121_v21 }
 0x1ec   :  { %195 = vrsqrt.f32 %v122_v22 }
 0x1f9   :  { %v196_v23 = vpop.eup %195 }
 0x1fa   :  { %v124_v25 = vmul.f32 %v196_v23, %v116_v17 }
 0x1fc   :  { %v131_v27 = vmul.f32 %v168_v24, %v124_v25 }
 0x1fe   :  { %v136_v28 = vadd.f32 %v169_v26, %v131_v27 }
 0x200   :  { %v137_v29 = vmin.f32 %v136_v28, 0.0  ;;  %vm142_vm3 = vcmp.gt.f32.partialorder %v136_v28, 0.0 }
 0x202   :  { %v138_v30 = vmul.f32 1.442695, %v137_v29 }
 0x204   :  { %197 = vpow2.f32 %v138_v30 }
 0x211   :  { %v198_v31 = vpop.eup %197 }
 0x212   :  { %v170_v32 = vadd.f32 -1.0, %v198_v31 }
 0x214   :  { %v141_v33 = vmul.f32 1.6732632, %v170_v32 }
 0x216   :  { %v143_v34 = vsel %vm142_vm3, %v136_v28, %v141_v33 }
 0x217   :  { %v144_v35 = vmul.f32 1.050701, %v143_v34 }
 0x219   :  { %v149_v37 = vmul.f32 %v147_v36, %v144_v35 }
 0x21b   :  { %150 = vst.msk [vmem:[#allocation2] sm:$0xff] %vm110_vm2, %v149_v37 }
 0x21c   :  { %210 = shalt.err (!%p207_p4)
}
 0x21d   :  { %160 = dma.vmem_to_hbm [thread:$0]  %s158_s30, 128, %s284_s4, [#allocation3]  }
 0x21e   :  { %219 = dma.done.wait [#allocation3], 128  }
 0x21f   :  { %220 = vsyncadd [#allocation3], 4294967168 }
 0x220   :  { %164 = vsyncpa [#allocation3], 1 }

</bundles_post_ra>
